<compile_context>
chip_gen: v7x
topology: tpu7x:2x2x1
jax: 0.10.0
libtpu: 0.0.40
codegen_flags: <defaults>
</compile_context>

<pallas_src>
import functools

import jax
import jax.numpy as jnp
from jax.experimental import pallas as pl
from jax.experimental.pallas import tpu as pltpu


def _layernorm2d_kernel(x_ref, w_ref, b_ref, o_ref, *, eps):
    # x_ref/o_ref: (bn, C, tile_hw) -- C on sublanes, spatial on lanes.
    # w_ref/b_ref: (C, 1)           -- broadcast across batch and lane axes.
    x = x_ref[...].astype(jnp.float32)
    mean = jnp.mean(x, axis=-2, keepdims=True)            # (bn, 1, T)
    mean_sq = jnp.mean(x * x, axis=-2, keepdims=True)     # one-pass moments (f32)
    var = jnp.maximum(mean_sq - mean * mean, 0.0)
    inv = jax.lax.rsqrt(var + eps)
    w = w_ref[...].astype(jnp.float32)                     # (C, 1)
    b = b_ref[...].astype(jnp.float32)
    o_ref[...] = ((x - mean) * (inv * w) + b).astype(o_ref.dtype)


def _round_up(x, m):
    return ((x + m - 1) // m) * m


def _sublane_multiple(itemsize):
    # Sub-32-bit dtypes pack along sublanes: f32 -> 8, bf16 -> 16, int8/fp8 -> 32.
    return 8 * max(1, 4 // max(1, itemsize))


def _vmem_capacity_bytes():
    try:
        info = pltpu.get_tpu_info()
        for attr in ("vmem_capacity_bytes", "vmem_bytes", "vmem_size_bytes"):
            v = getattr(info, attr, None)
            if v:
                return int(v)
    except Exception:
        pass
    return 64 << 20  # conservative fallback: assume smallest current VMEM (v7x-class)


def _vmem_budget():
    """Returns (vmem_limit_bytes, block_headroom_bytes)."""
    cap = _vmem_capacity_bytes()
    if cap >= (96 << 20):
        # v5e / v6e class: 128 MiB physical -> spend it on bigger tiles.
        return 64 << 20, 48 << 20
    # v7x class: 64 MiB physical -> keep headroom for full double-buffering.
    return 48 << 20, 24 << 20


def _choose_tiling(N, C, HW, itemsize, vmem_limit_bytes, headroom_bytes):
    """Pick (bn, tile_hw, vmem_limit_bytes) for block shape (bn, C, tile_hw)."""
    padded_c = _round_up(C, _sublane_multiple(itemsize))
    # VMEM bytes per block element:
    #   in + out blocks, each double-buffered (2 * 2 * itemsize),
    #   + ~2 full-tile f32 intermediates from the astype(float32) chain.
    bytes_per_elem = 4 * itemsize + 2 * 4
    max_block_elems = max(1, headroom_bytes // bytes_per_elem)

    full_elems = padded_c * _round_up(HW, 128)  # lane-padded full spatial extent
    if full_elems <= max_block_elems:
        # Full HW extent (exempt from the 128-divisibility rule) -> no ragged
        # lane tail. Batch N into the block to amortize per-step overhead.
        tile_hw = HW
        bn = max(1, min(N, max_block_elems // full_elems))
    else:
        # Tile the spatial axis in lane-dense multiples of 128.
        bn = 1
        by_budget = max_block_elems // padded_c
        tile_hw = min(HW, by_budget)
        tile_hw = max(128, (tile_hw // 128) * 128)
        # Guard: for very large C even the minimum legal 128-lane tile may
        # exceed the budget; raise the VMEM limit to the real footprint
        # instead of silently emitting an oversized block.
        needed = bytes_per_elem * padded_c * tile_hw + (4 << 20)
        vmem_limit_bytes = max(vmem_limit_bytes, needed)
    return bn, tile_hw, vmem_limit_bytes


def layernorm2d(x, weight, bias, *, eps=1e-5):
    """x: (N, C, H, W); weight, bias: (C,). Returns (N, C, H, W).

    LayerNorm over the channel dim (matches PyTorch LayerNorm2d forward).
    """
    N, C, H, W = x.shape
    HW = H * W
    itemsize = jnp.dtype(x.dtype).itemsize

    # Contiguous collapse of the trailing spatial dims: no data movement.
    x3 = x.reshape(N, C, HW)
    w2 = weight.reshape(C, 1)
    b2 = bias.reshape(C, 1)

    vmem_limit, headroom = _vmem_budget()
    bn, tile_hw, vmem_limit = _choose_tiling(N, C, HW, itemsize, vmem_limit, headroom)
    grid = (pl.cdiv(N, bn), pl.cdiv(HW, tile_hw))

    cost = pl.CostEstimate(
        flops=8 * N * C * HW,                    # x*x, two reduces, sub, 2 muls, add (rough)
        transcendentals=N * HW,                  # one rsqrt per spatial position
        bytes_accessed=2 * N * C * HW * itemsize + 2 * C * itemsize,
    )

    out = pl.pallas_call(
        functools.partial(_layernorm2d_kernel, eps=eps),
        out_shape=jax.ShapeDtypeStruct((N, C, HW), x.dtype),
        grid_spec=pltpu.PrefetchScalarGridSpec(
            num_scalar_prefetch=0,
            grid=grid,
            in_specs=[
                pl.BlockSpec((bn, C, tile_hw), lambda n, j: (n, 0, j)),
                pl.BlockSpec((C, 1), lambda n, j: (0, 0)),
                pl.BlockSpec((C, 1), lambda n, j: (0, 0)),
            ],
            out_specs=pl.BlockSpec((bn, C, tile_hw), lambda n, j: (n, 0, j)),
        ),
        compiler_params=pltpu.CompilerParams(
            dimension_semantics=("parallel", "parallel"),  # independent axes (megacore-friendly)
            vmem_limit_bytes=vmem_limit,
        ),
        cost_estimate=cost,
    )(x3, w2, b2)

    return out.reshape(N, C, H, W)


if __name__ == "__main__":
    key = jax.random.PRNGKey(0)
    N, C, H, W = 2, 4, 16, 16
    x = jax.random.normal(key, (N, C, H, W), dtype=jnp.float32)

    # nn.LayerNorm default init: weight=1, bias=0 (deterministic).
    weight = jnp.ones((C,), dtype=jnp.float32)
    bias = jnp.zeros((C,), dtype=jnp.float32)

    y = layernorm2d(x, weight, bias, eps=1e-5)
    jax.block_until_ready(y)

    # Reference check (pure JAX, same math path as torch LayerNorm2d).
    x_nhwc = jnp.transpose(x, (0, 2, 3, 1))
    mean = jnp.mean(x_nhwc, axis=-1, keepdims=True)
    var = jnp.mean((x_nhwc - mean) ** 2, axis=-1, keepdims=True)
    ref = (x_nhwc - mean) / jnp.sqrt(var + 1e-5) * weight + bias
    ref = jnp.transpose(ref, (0, 3, 1, 2))
    assert jnp.allclose(y, ref, atol=1e-5, rtol=1e-5), "mismatch vs reference"

    print("KERNEL_OK")
</pallas_src>

<mosaic_0001>
module attributes {stable_mosaic.version = 11 : i64} {
  func.func @_layernorm2d_kernel(%arg0: i32, %arg1: i32, %arg2: memref<2x4x256xf32, #tpu.memory_space<vmem>>, %arg3: memref<4x1xf32, #tpu.memory_space<vmem>>, %arg4: memref<4x1xf32, #tpu.memory_space<vmem>>, %arg5: memref<2x4x256xf32, #tpu.memory_space<vmem>>) attributes {dimension_semantics = [#tpu.dimension_semantics<parallel>, #tpu.dimension_semantics<parallel>], iteration_bounds = array<i64: 1, 1>, scalar_prefetch = 0 : i64, scratch_operands = 0 : i64, tpu.core_type = #tpu.core_type<tc>, window_params = [{transform_indices = @transform_0, window_bounds = array<i64: 2, 4, 256>}, {pipeline_mode = #tpu.pipeline_mode<synchronous>, transform_indices = @transform_1, window_bounds = array<i64: 4, 1>}, {pipeline_mode = #tpu.pipeline_mode<synchronous>, transform_indices = @transform_2, window_bounds = array<i64: 4, 1>}, {transform_indices = @transform_3, window_bounds = array<i64: 2, 4, 256>}]} {
    %c0 = arith.constant 0 : index
    %c0_0 = arith.constant 0 : index
    %c0_1 = arith.constant 0 : index
    %0 = vector.load %arg2[%c0, %c0_0, %c0_1] : memref<2x4x256xf32, #tpu.memory_space<vmem>>, vector<2x4x256xf32>
    %cst = arith.constant dense<0.000000e+00> : vector<2x256xf32>
    %1 = vector.multi_reduction <add>, %0, %cst [1] : vector<2x4x256xf32> to vector<2x256xf32>
    %2 = vector.shape_cast %1 : vector<2x256xf32> to vector<2x1x256xf32>
    %cst_2 = arith.constant 4.000000e+00 : f32
    %3 = vector.broadcast %cst_2 : f32 to vector<2x1x256xf32>
    %4 = arith.divf %2, %3 : vector<2x1x256xf32>
    %5 = arith.mulf %0, %0 : vector<2x4x256xf32>
    %cst_3 = arith.constant dense<0.000000e+00> : vector<2x256xf32>
    %6 = vector.multi_reduction <add>, %5, %cst_3 [1] : vector<2x4x256xf32> to vector<2x256xf32>
    %7 = vector.shape_cast %6 : vector<2x256xf32> to vector<2x1x256xf32>
    %cst_4 = arith.constant 4.000000e+00 : f32
    %8 = vector.broadcast %cst_4 : f32 to vector<2x1x256xf32>
    %9 = arith.divf %7, %8 : vector<2x1x256xf32>
    %10 = arith.mulf %4, %4 : vector<2x1x256xf32>
    %11 = arith.subf %9, %10 : vector<2x1x256xf32>
    %cst_5 = arith.constant 0.000000e+00 : f32
    %12 = vector.broadcast %cst_5 : f32 to vector<2x1x256xf32>
    %13 = arith.maximumf %11, %12 : vector<2x1x256xf32>
    %cst_6 = arith.constant 9.99999974E-6 : f32
    %14 = vector.broadcast %cst_6 : f32 to vector<2x1x256xf32>
    %15 = arith.addf %13, %14 : vector<2x1x256xf32>
    %16 = math.rsqrt %15 : vector<2x1x256xf32>
    %c0_7 = arith.constant 0 : index
    %c0_8 = arith.constant 0 : index
    %17 = vector.load %arg3[%c0_7, %c0_8] : memref<4x1xf32, #tpu.memory_space<vmem>>, vector<4x1xf32>
    %c0_9 = arith.constant 0 : index
    %c0_10 = arith.constant 0 : index
    %18 = vector.load %arg4[%c0_9, %c0_10] : memref<4x1xf32, #tpu.memory_space<vmem>>, vector<4x1xf32>
    %19 = vector.broadcast %4 : vector<2x1x256xf32> to vector<2x4x256xf32>
    %20 = arith.subf %0, %19 : vector<2x4x256xf32>
    %21 = vector.shape_cast %17 : vector<4x1xf32> to vector<1x4x1xf32>
    %22 = vector.broadcast %16 : vector<2x1x256xf32> to vector<2x4x256xf32>
    %23 = vector.broadcast %21 : vector<1x4x1xf32> to vector<2x4x256xf32>
    %24 = arith.mulf %22, %23 : vector<2x4x256xf32>
    %25 = arith.mulf %20, %24 : vector<2x4x256xf32>
    %26 = vector.shape_cast %18 : vector<4x1xf32> to vector<1x4x1xf32>
    %27 = vector.broadcast %26 : vector<1x4x1xf32> to vector<2x4x256xf32>
    %28 = arith.addf %25, %27 : vector<2x4x256xf32>
    %c0_11 = arith.constant 0 : index
    %c0_12 = arith.constant 0 : index
    %c0_13 = arith.constant 0 : index
    %29 = vector.load %arg5[%c0_11, %c0_12, %c0_13] : memref<2x4x256xf32, #tpu.memory_space<vmem>>, vector<2x4x256xf32>
    tpu.vector_store %arg5[%c0_11, %c0_12, %c0_13], %28 {strides = array<i32>} : memref<2x4x256xf32, #tpu.memory_space<vmem>>, vector<2x4x256xf32>,
    return
  }
  func.func @transform_0(%arg0: i32, %arg1: i32) -> (i32, i32, i32) {
    %c0_i32 = arith.constant 0 : i32
    %c0_i32_0 = arith.constant 0 : i32
    return %arg0, %c0_i32, %arg1 : i32, i32, i32
  }
  func.func @transform_1(%arg0: i32, %arg1: i32) -> (i32, i32) {
    %c0_i32 = arith.constant 0 : i32
    %c0_i32_0 = arith.constant 0 : i32
    %c0_i32_1 = arith.constant 0 : i32
    return %c0_i32, %c0_i32_0 : i32, i32
  }
  func.func @transform_2(%arg0: i32, %arg1: i32) -> (i32, i32) {
    %c0_i32 = arith.constant 0 : i32
    %c0_i32_0 = arith.constant 0 : i32
    %c0_i32_1 = arith.constant 0 : i32
    return %c0_i32, %c0_i32_0 : i32, i32
  }
  func.func @transform_3(%arg0: i32, %arg1: i32) -> (i32, i32, i32) {
    %c0_i32 = arith.constant 0 : i32
    %c0_i32_0 = arith.constant 0 : i32
    return %arg0, %c0_i32, %arg1 : i32, i32, i32
  }
}

</mosaic_0001>

<bundles_post_ra>
// kernel: tpu_custom_call.1
= control target key start
LH: loop header
LB: loop body
LE: loop exit
PB: predicated region body
PF: predicated region fallthrough
CT: control target
= control target key end

     0   :  { %8 = vsyncpa [#allocation3], 0  ;;  %s346_s0 = inlined_call_operand.hbm [shape: f32[2,4,256], index: 0, kind: input, shape index: {}]   ;;  %s347_s1 = inlined_call_operand.vmem [shape: f32[4,1], index: 1, kind: input, shape index: {}]   ;;  %s348_s2 = inlined_call_operand.vmem [shape: f32[4,1], index: 2, kind: input, shape index: {}]   ;;  %s349_s3 = inlined_call_operand.hbm [shape: f32[2,4,256], index: 3, kind: output, shape index: {}]  }
   0x1   :  { %9 = vsyncpa [#allocation4], 0  ;;  %s260_s12 = smov [#allocation2]   ;;  %s212_s16 = scalar_lea.hbm %s346_s0, 256 }
   0x2   :  { %s15_s13 = sshll.u32 %s260_s12, 4  ;;  %p213_p0 = scmp.ne.s32.totalorder %s346_s0, %s212_s16  ;;  %s16_s13 = int_to_ptr.vmem [resolvable:$true] %s15_s13 }
   0x3   :  { %p216_p1 = scmp.lt.u32.totalorder %s212_s16, %s346_s0 }
   0x5   :  { %p218_p2 = pnand %p216_p1, %p213_p0 }
   0x7   :  { %221 = shalt.err (!%p218_p2)
}
   0x8   :  { %s222_s21 = scalar_lea.vmem %s16_s13, 256  ;;  %p227_p4 = scmp.lt.s32.totalorder %s16_s13, %s16_s13 }
   0x9   :  { %p223_p3 = scmp.ne.s32.totalorder %s16_s13, %s222_s21  ;;  %p228_p5 = scmp.lt.s32.totalorder %s222_s21, %s222_s21 }
   0xb   :  { %p229_p6 = por %p228_p5, %p227_p4 }
   0xd   :  { %p230_p7 = pnand %p229_p6, %p223_p3 }
   0xf   :  { %233 = shalt.err (!%p230_p7)
}
  0x10   :  { %s261_s22 = smov 128   ;;  %s262_s23 = smov 8  }
  0x11   :  { %21 = dma.hbm_to_vmem [thread:$0]  %s346_s0, 256, %s16_s13, [#allocation3], %s261_s22, %s261_s22, %s262_s23  }
  0x12   :  { %256 = dma.done.wait [#allocation3], 256  }
  0x13   :  { %257 = vsyncadd [#allocation3], 4294967040  ;;  %v263_v0 = vmov 0   ;;  %v131_v1 = vld [vmem:[%s347_s1] sm:$0xf]  ;;  %v309_v4 = vld [vmem:[#allocation2 + $0x8] sm:$0xff] }
  0x14   :  { %201 = vset.pattern.permute.xlu0 %v263_v0  ;;  %v132_v2 = vld [vmem:[%s348_s2] sm:$0xf]  ;;  %vm37_vm0 = vcmask 1043456   ;;  %v34_v7 = vcombine.high %v309_v4, %v309_v4  ;;  %v72_v8 = vmul.f32 %v309_v4, %v309_v4  ;;  %s265_s0 = smov [#allocation5]  }
  0x15   :  { %145 = vperm.xlu0 %201, %v131_v1   ;;  %v307_v3 = vld [vmem:[#allocation2] sm:$0xff]  ;;  %v52_v12 = vsel %vm37_vm0, %v309_v4, 0.0  ;;  %s183_s1 = sshll.u32 %s265_s0, 4  ;;  %s184_s1 = int_to_ptr.vmem [resolvable:$true] %s183_s1 }
  0x16   :  { %v33_v5 = vcombine.high %v307_v3, %v307_v3  ;;  %v71_v6 = vmul.f32 %v307_v3, %v307_v3  ;;  %v38_v9 = vsel %vm37_vm0, %v307_v3, 0.0  ;;  %v59_v14 = vsel %vm37_vm0, %v34_v7, 0.0  ;;  %s234_s2 = scalar_lea.vmem %s184_s1, 256  ;;  %p239_p9 = scmp.lt.s32.totalorder %s184_s1, %s184_s1 }
  0x17   :  { %v39_v13 = vrot.slane %v38_v9, 4  ;;  %v76_v15 = vcombine.high %v72_v8, %v72_v8  ;;  %v53_v18 = vrot.slane %v52_v12, 4  ;;  %v60_v20 = vrot.slane %v59_v14, 4  ;;  %p235_p8 = scmp.ne.s32.totalorder %s184_s1, %s234_s2  ;;  %p240_p10 = scmp.lt.s32.totalorder %s234_s2, %s234_s2 }
  0x18   :  { %v45_v10 = vsel %vm37_vm0, %v33_v5, 0.0  ;;  %v75_v11 = vcombine.high %v71_v6, %v71_v6  ;;  %v79_v17 = vsel %vm37_vm0, %v71_v6, 0.0  ;;  %v93_v21 = vsel %vm37_vm0, %v72_v8, 0.0 }
  0x19   :  { %164 = vperm.xlu0 %201, %v132_v2   ;;  %v46_v16 = vrot.slane %v45_v10, 4  ;;  %v40_v22 = vadd.f32 %v39_v13, %v38_v9  ;;  %v80_v23 = vrot.slane %v79_v17, 4  ;;  %v100_v24 = vsel %vm37_vm0, %v76_v15, 0.0  ;;  %p241_p11 = por %p240_p10, %p239_p9 }
  0x1a   :  { %v86_v19 = vsel %vm37_vm0, %v75_v11, 0.0  ;;  %v54_v27 = vadd.f32 %v53_v18, %v52_v12  ;;  %v94_v28 = vrot.slane %v93_v21, 4  ;;  %v61_v29 = vadd.f32 %v60_v20, %v59_v14 }
  0x1b   :  { %v47_v25 = vadd.f32 %v46_v16, %v45_v10  ;;  %v87_v26 = vrot.slane %v86_v19, 4  ;;  %v101_v30 = vrot.slane %v100_v24, 4  ;;  %v41_v31 = vrot.slane %v40_v22, 2  ;;  %p242_p12 = pnand %p241_p11, %p235_p8 }
  0x1c   :  { %v81_v32 = vadd.f32 %v80_v23, %v79_v17  ;;  %v55_v35 = vrot.slane %v54_v27, 2  ;;  %v95_v36 = vadd.f32 %v94_v28, %v93_v21  ;;  %v62_v37 = vrot.slane %v61_v29, 2 }
  0x1d   :  { %v48_v33 = vrot.slane %v47_v25, 2  ;;  %v88_v34 = vadd.f32 %v87_v26, %v86_v19  ;;  %v102_v38 = vadd.f32 %v101_v30, %v100_v24  ;;  %v42_v39 = vadd.f32 %v41_v31, %v40_v22 }
  0x1e   :  { %v82_v40 = vrot.slane %v81_v32, 2  ;;  %v56_v43 = vadd.f32 %v55_v35, %v54_v27  ;;  %v96_v44 = vrot.slane %v95_v36, 2  ;;  %v63_v45 = vadd.f32 %v62_v37, %v61_v29 }
  0x1f   :  { %v49_v41 = vadd.f32 %v48_v33, %v47_v25  ;;  %v89_v42 = vrot.slane %v88_v34, 2  ;;  %v103_v46 = vrot.slane %v102_v38, 2  ;;  %v43_v47 = vrot.slane %v42_v39, 1 }
  0x20   :  { %v83_v48 = vadd.f32 %v82_v40, %v81_v32  ;;  %v57_v51 = vrot.slane %v56_v43, 1  ;;  %v97_v52 = vadd.f32 %v96_v44, %v95_v36  ;;  %v64_v53 = vrot.slane %v63_v45, 1 }
  0x21   :  { %v50_v49 = vrot.slane %v49_v41, 1  ;;  %v90_v50 = vadd.f32 %v89_v42, %v88_v34  ;;  %v104_v54 = vadd.f32 %v103_v46, %v102_v38  ;;  %v44_v55 = vadd.f32 %v43_v47, %v42_v39 }
  0x22   :  { %v84_v56 = vrot.slane %v83_v48, 1  ;;  %v58_v59 = vadd.f32 %v57_v51, %v56_v43  ;;  %v98_v60 = vrot.slane %v97_v52, 1  ;;  %v65_v61 = vadd.f32 %v64_v53, %v63_v45 }
  0x23   :  { %v51_v57 = vadd.f32 %v50_v49, %v49_v41  ;;  %v91_v58 = vrot.slane %v90_v50, 1  ;;  %v105_v62 = vrot.slane %v104_v54, 1  ;;  %v67_v63 = vmul.f32 0.25, %v44_v55 }
  0x24   :  { %v85_v0 = vadd.f32 %v84_v56, %v83_v48  ;;  %v69_v5 = vmul.f32 0.25, %v58_v59  ;;  %v99_v6 = vadd.f32 %v98_v60, %v97_v52  ;;  %v70_v7 = vmul.f32 0.25, %v65_v61 }
  0x25   :  { %v68_v1 = vmul.f32 0.25, %v51_v57  ;;  %v92_v2 = vadd.f32 %v91_v58, %v90_v50  ;;  %v106_v8 = vadd.f32 %v105_v62, %v104_v54  ;;  %v111_v10 = vmul.f32 %v67_v63, %v67_v63 }
  0x26   :  { %v107_v9 = vmul.f32 0.25, %v85_v0  ;;  %v109_v13 = vmul.f32 0.25, %v99_v6  ;;  %v113_v14 = vmul.f32 %v69_v5, %v69_v5  ;;  %v114_v16 = vmul.f32 %v70_v7, %v70_v7 }
  0x27   :  { %v108_v11 = vmul.f32 0.25, %v92_v2  ;;  %v112_v12 = vmul.f32 %v68_v1, %v68_v1  ;;  %v110_v15 = vmul.f32 0.25, %v106_v8  ;;  %v264_v29 = vmov 839922192  }
  0x28   :  { %v115_v17 = vsub.f32 %v107_v9, %v111_v10  ;;  %v117_v19 = vsub.f32 %v109_v13, %v113_v14  ;;  %v167_v30 = vunpack.c.l.s4 %v264_v29  ;;  %v169_v31 = vlaneseq }
  0x29   :  { %v116_v18 = vsub.f32 %v108_v11, %v112_v12  ;;  %v118_v20 = vsub.f32 %v110_v15, %v114_v16  ;;  %v137_v36 = vcombine.low %v67_v63, %v68_v1  ;;  %v138_v37 = vcombine.low %v69_v5, %v70_v7 }
  0x2a   :  { %v119_v21 = vmax.f32 %v115_v17, 0.0  ;;  %v121_v23 = vmax.f32 %v117_v19, 0.0  ;;  %v168_v34 = vunpack.c.0.s8 %v167_v30  ;;  %v170_v35 = vshrl.u32 %v169_v31, 7 }
  0x2b   :  { %v120_v22 = vmax.f32 %v116_v18, 0.0  ;;  %v122_v24 = vmax.f32 %v118_v20, 0.0  ;;  %v141_v42 = vsub.f32 %v307_v3, %v137_v36  ;;  %v142_v43 = vsub.f32 %v309_v4, %v138_v37 }
  0x2c   :  { %v123_v25 = vadd.f32 1e-05, %v119_v21  ;;  %v125_v27 = vadd.f32 1e-05, %v121_v23  ;;  %v171_v41 = vsub.s32 %v168_v34, %v170_v35 }
  0x2d   :  { %v124_v26 = vadd.f32 1e-05, %v120_v22  ;;  %v126_v28 = vadd.f32 1e-05, %v122_v24 }
  0x2e   :  { %204 = vrsqrt.f32 %v123_v25 }
  0x2f   :  { %206 = vrsqrt.f32 %v124_v26 }
  0x30   :  { %208 = vrsqrt.f32 %v125_v27 }
  0x31   :  { %210 = vrsqrt.f32 %v126_v28 }
  0x38   :  { %v205_v32 = vpop.eup %204 }
  0x39   :  { %v207_v33 = vpop.eup %206 }
  0x3a   :  { %v209_v38 = vpop.eup %208 }
  0x3b   :  { %v211_v39 = vpop.eup %210 }
  0x94   :  { %v146_v40 = vpop.permute.xlu0 %145 }
  0x95   :  { %v148_v44 = vmul.f32 %v205_v32, %v146_v40  ;;  %v149_v45 = vmul.f32 %v207_v33, %v146_v40  ;;  %v150_v46 = vmul.f32 %v209_v38, %v146_v40  ;;  %v151_v47 = vmul.f32 %v211_v39, %v146_v40 }
  0x97   :  { %v156_v48 = vcombine.low %v148_v44, %v149_v45  ;;  %v157_v49 = vcombine.low %v150_v46, %v151_v47 }
  0x98   :  { %v165_v50 = vpop.permute.xlu0 %164 }
  0x99   :  { %v160_v51 = vmul.f32 %v156_v48, %v141_v42  ;;  %v161_v52 = vmul.f32 %v157_v49, %v142_v43  ;;  %v172_v53 = vrot.slane %v165_v50, %v171_v41 }
  0x9b   :  { %v174_v54 = vadd.f32 %v172_v53, %v160_v51  ;;  %v175_v55 = vadd.f32 %v172_v53, %v161_v52 }
  0x9d   :  { %176 = vst [vmem:[#allocation5] sm:$0xff] %v174_v54  ;;  %177 = vst [vmem:[#allocation5 + $0x8] sm:$0xff] %v175_v55 }
  0x9e   :  { %245 = shalt.err (!%p242_p12)
}
  0x9f   :  { %s246_s5 = scalar_lea.hbm %s349_s3, 256 }
  0xa0   :  { %p247_p13 = scmp.ne.s32.totalorder %s349_s3, %s246_s5  ;;  %p250_p0 = scmp.lt.u32.totalorder %s246_s5, %s349_s3 }
  0xa2   :  { %p252_p1 = pnand %p250_p0, %p247_p13 }
  0xa4   :  { %255 = shalt.err (!%p252_p1)
}
  0xa5   :  { %189 = dma.vmem_to_hbm [thread:$0]  %s184_s1, 256, %s349_s3, [#allocation4], %s261_s22, %s261_s22, %s262_s23  }
  0xa6   :  { %258 = dma.done.wait [#allocation4], 256  }
  0xa7   :  { %259 = vsyncadd [#allocation4], 4294967040 }
  0xa8   :  { %193 = vsyncpa [#allocation3], 1 }
  0xa9   :  { %194 = vsyncpa [#allocation4], 1 }

</bundles_post_ra>
